<compile_context>
chip_gen: v6e
topology: v6e:2x2x1
jax: 0.10.0
libtpu: 0.0.40
codegen_flags: <defaults>
</compile_context>

<pallas_src>
import functools

import jax
import jax.numpy as jnp
from jax import lax
from jax.experimental import pallas as pl
from jax.experimental.pallas import tpu as pltpu


def _round_up(x, m):
    return (x + m - 1) // m * m


def _global_mean_pool_kernel(batch_ref, x_ref, o_ref, sum_ref, cnt_ref, *,
                             num_graphs, compute_dtype):
    # Grid = (F_blocks [parallel], N_blocks [arbitrary, reduction]).
    step_n = pl.program_id(1)

    @pl.when(step_n == 0)
    def _():
        sum_ref[...] = jnp.zeros_like(sum_ref)
        cnt_ref[...] = jnp.zeros_like(cnt_ref)

    x_tile = x_ref[...]                                  # (TN, TF)
    if x_tile.dtype != compute_dtype:
        x_tile = x_tile.astype(compute_dtype)
    b_ids = batch_ref[...]                               # (1, TN) int32 (-1 = padding)
    tn = x_tile.shape[0]

    graph_ids = lax.broadcasted_iota(jnp.int32, (num_graphs, tn), 0)
    match = graph_ids == b_ids                           # (B, TN) bool; -1 never matches
    onehot = match.astype(compute_dtype)                 # keep bf16 if x is bf16

    # Segment-sum of features (MXU, f32 accumulation) and exact f32 node counts.
    sum_ref[...] += jnp.dot(onehot, x_tile, preferred_element_type=jnp.float32)
    cnt_ref[...] += jnp.sum(match.astype(jnp.float32), axis=1, keepdims=True)

    @pl.when(step_n == pl.num_programs(1) - 1)
    def _():
        cnt = cnt_ref[...]
        inv = jnp.where(cnt > 0, 1.0 / jnp.maximum(cnt, 1.0), 0.0)
        o_ref[...] = (sum_ref[...] * inv).astype(o_ref.dtype)


def _vmem_budget_bytes(tile_n, tf, batch_size, x_itemsize, out_itemsize,
                       compute_itemsize):
    """Rough VMEM usage estimate (lane/sublane padded, double-buffered)."""
    lane = 128
    tf_pad = max(_round_up(tf, lane), lane)
    tn_pad = _round_up(tile_n, 8)
    tn_lane = _round_up(tile_n, lane)
    b_pad = _round_up(batch_size, 8)
    x_buf = 2 * tn_pad * tf_pad * x_itemsize             # double-buffered x tile
    b_buf = 2 * 8 * tn_lane * 4                          # (1, TN) int32 batch ids
    o_buf = 2 * b_pad * tf_pad * out_itemsize            # output block
    sum_s = b_pad * tf_pad * 4                           # f32 sum scratch
    cnt_s = b_pad * lane * 4                             # f32 count scratch
    onehot = 2 * b_pad * tn_lane * max(compute_itemsize, 4)  # onehot + compare temp
    return x_buf + b_buf + o_buf + sum_s + cnt_s + onehot


def global_mean_pool_pallas(x, batch, batch_size, *, tile_n=1024, tile_f=512):
    """Batch-wise graph-level mean of node features
    (== torch_geometric gnn.global_mean_pool(x, batch, batch_size))."""
    n, f = x.shape

    # --- choose node tile: big (>=256-multiple) but not bigger than needed ---
    tile_n = max(256, _round_up(tile_n, 256))
    tile_n = min(tile_n, _round_up(max(n, 1), 256))

    # --- choose feature tile: full F if small, else 128-multiple blocks ---
    if f <= tile_f:
        tf = f
        f_padded = f
    else:
        tf = _round_up(tile_f, 128)
        f_padded = _round_up(f, tf)

    # --- pad nodes (batch id -1 is never matched) and features ---
    pad_n = (-n) % tile_n
    pad_f = f_padded - f
    if pad_n or pad_f:
        x = jnp.pad(x, ((0, pad_n), (0, pad_f)))
    if pad_n:
        batch = jnp.pad(batch, (0, pad_n), constant_values=-1)
    n_padded = x.shape[0]
    batch2d = batch.astype(jnp.int32).reshape(1, n_padded)

    # --- compute dtype: keep bf16 un-upcast (MXU bf16 rate, half the VMEM) ---
    if x.dtype in (jnp.dtype(jnp.bfloat16), jnp.dtype(jnp.float32)):
        compute_dtype = x.dtype
    else:
        compute_dtype = jnp.float32

    grid = (f_padded // tf, n_padded // tile_n)

    est = _vmem_budget_bytes(tile_n, tf, batch_size,
                             jnp.dtype(x.dtype).itemsize,
                             jnp.dtype(x.dtype).itemsize,
                             jnp.dtype(compute_dtype).itemsize)
    # Generous headroom, but stay under v7x's 64 MiB physical VMEM.
    vmem_limit = int(min(max(2 * est, 32 * 1024 * 1024), 56 * 1024 * 1024))

    kernel = functools.partial(_global_mean_pool_kernel,
                               num_graphs=batch_size,
                               compute_dtype=compute_dtype)

    out = pl.pallas_call(
        kernel,
        out_shape=jax.ShapeDtypeStruct((batch_size, f_padded), x.dtype),
        grid_spec=pltpu.PrefetchScalarGridSpec(
            num_scalar_prefetch=0,
            grid=grid,
            in_specs=[
                pl.BlockSpec((1, tile_n), lambda j, i: (0, i)),   # batch ids
                pl.BlockSpec((tile_n, tf), lambda j, i: (i, j)),  # node features
            ],
            out_specs=pl.BlockSpec((batch_size, tf), lambda j, i: (0, j)),
            scratch_shapes=[
                pltpu.VMEM((batch_size, tf), jnp.float32),  # running segment sums
                pltpu.VMEM((batch_size, 1), jnp.float32),   # running segment counts
            ],
        ),
        compiler_params=pltpu.CompilerParams(
            dimension_semantics=("parallel", "arbitrary"),
            vmem_limit_bytes=vmem_limit),
    )(batch2d, x)

    if pad_f:
        out = out[:, :f]
    return out


class GlobalMeanPool:
    """JAX/Pallas port of GOOD GlobalMeanPool (mitigation_readout=None path)."""

    def __init__(self, **kwargs):
        self.mitigation_readout = kwargs.get('mitigation_readout', None)
        print('mitigation_readout = ', self.mitigation_readout)

    def __call__(self, x, batch, batch_size=None, edge_index=None,
                 edge_mask=None):
        if batch_size is None:
            # Note: host sync; assumes batch is sorted (same as the PyTorch ref).
            batch_size = int(batch[-1]) + 1
        if self.mitigation_readout == 'weighted':
            # TODO(synk): 'weighted' mitigation readout (edge_mask scatter_mean
            # node re-weighting) not implemented; only the default (None) path.
            raise NotImplementedError
        return global_mean_pool_pallas(x, batch, batch_size)


if __name__ == "__main__":
    key = jax.random.PRNGKey(0)
    k_x, _ = jax.random.split(key)

    num_graphs = 4
    feat = 32
    # Deterministic node counts per graph (N = 300, non-multiple of the tile,
    # to exercise padding).
    nodes_per_graph = [90, 60, 110, 40]
    n_total = sum(nodes_per_graph)

    x = jax.random.normal(k_x, (n_total, feat), dtype=jnp.float32)
    batch = jnp.concatenate([
        jnp.full((c,), g, dtype=jnp.int32)
        for g, c in enumerate(nodes_per_graph)
    ])

    pool = GlobalMeanPool()
    out = pool(x, batch, batch_size=num_graphs)
    out = jax.block_until_ready(out)

    # Pure-JAX reference: segment mean.
    seg_sum = jax.ops.segment_sum(x, batch, num_segments=num_graphs)
    seg_cnt = jax.ops.segment_sum(jnp.ones((n_total, 1), jnp.float32), batch,
                                  num_segments=num_graphs)
    ref = seg_sum / jnp.maximum(seg_cnt, 1.0)

    assert out.shape == (num_graphs, feat)
    assert out.dtype == x.dtype
    assert jnp.allclose(out, ref, atol=1e-5, rtol=1e-5)

    # bf16 path (no upcast inside the kernel): looser tolerance.
    x_bf16 = x.astype(jnp.bfloat16)
    out_bf16 = jax.block_until_ready(pool(x_bf16, batch, batch_size=num_graphs))
    ref_bf16 = (jax.ops.segment_sum(x_bf16.astype(jnp.float32), batch,
                                    num_segments=num_graphs)
                / jnp.maximum(seg_cnt, 1.0))
    assert out_bf16.dtype == jnp.bfloat16
    assert jnp.allclose(out_bf16.astype(jnp.float32), ref_bf16,
                        atol=2e-2, rtol=2e-2)

    print("KERNEL_OK")
</pallas_src>

<mosaic_0001>
module attributes {stable_mosaic.version = 11 : i64} {
  func.func @_global_mean_pool_kernel(%arg0: i32, %arg1: i32, %arg2: memref<1x512xi32, #tpu.memory_space<vmem>>, %arg3: memref<512x32xf32, #tpu.memory_space<vmem>>, %arg4: memref<4x32xf32, #tpu.memory_space<vmem>>, %arg5: memref<4x32xf32, #tpu.memory_space<vmem>>, %arg6: memref<4x1xf32, #tpu.memory_space<vmem>>) attributes {dimension_semantics = [#tpu.dimension_semantics<parallel>, #tpu.dimension_semantics<arbitrary>], iteration_bounds = array<i64: 1, 1>, scalar_prefetch = 0 : i64, scratch_operands = 2 : i64, tpu.core_type = #tpu.core_type<tc>, window_params = [{transform_indices = @transform_0, window_bounds = array<i64: 1, 512>}, {transform_indices = @transform_1, window_bounds = array<i64: 512, 32>}, {transform_indices = @transform_2, window_bounds = array<i64: 4, 32>}]} {
    %c0_i32 = arith.constant 0 : i32
    %0 = arith.cmpi eq, %arg1, %c0_i32 : i32
    %1 = arith.extui %0 : i1 to i32
    %c0_i32_0 = arith.constant 0 : i32
    %2 = arith.cmpi ne, %1, %c0_i32_0 : i32
    scf.if %2 {
      %cst_15 = arith.constant 0.000000e+00 : f32
      %24 = vector.broadcast %cst_15 : f32 to vector<4x32xf32>
      %c0_16 = arith.constant 0 : index
      %c0_17 = arith.constant 0 : index
      %25 = vector.load %arg5[%c0_16, %c0_17] : memref<4x32xf32, #tpu.memory_space<vmem>>, vector<4x32xf32>
      tpu.vector_store %arg5[%c0_16, %c0_17], %24 {strides = array<i32>} : memref<4x32xf32, #tpu.memory_space<vmem>>, vector<4x32xf32>,
      %cst_18 = arith.constant 0.000000e+00 : f32
      %26 = vector.broadcast %cst_18 : f32 to vector<4x1xf32>
      %c0_19 = arith.constant 0 : index
      %c0_20 = arith.constant 0 : index
      %27 = vector.load %arg6[%c0_19, %c0_20] : memref<4x1xf32, #tpu.memory_space<vmem>>, vector<4x1xf32>
      tpu.vector_store %arg6[%c0_19, %c0_20], %26 {strides = array<i32>} : memref<4x1xf32, #tpu.memory_space<vmem>>, vector<4x1xf32>,
    } else {
    }
    %c0 = arith.constant 0 : index
    %c0_1 = arith.constant 0 : index
    %3 = vector.load %arg3[%c0, %c0_1] : memref<512x32xf32, #tpu.memory_space<vmem>>, vector<512x32xf32>
    %c0_2 = arith.constant 0 : index
    %c0_3 = arith.constant 0 : index
    %4 = vector.load %arg2[%c0_2, %c0_3] : memref<1x512xi32, #tpu.memory_space<vmem>>, vector<1x512xi32>
    %5 = tpu.iota {dimensions = array<i32: 0>} : vector<4x512xi32>
    %6 = vector.broadcast %4 : vector<1x512xi32> to vector<4x512xi32>
    %7 = arith.cmpi eq, %5, %6 : vector<4x512xi32>
    %8 = arith.extui %7 : vector<4x512xi1> to vector<4x512xi32>
    %9 = arith.sitofp %8 : vector<4x512xi32> to vector<4x512xf32>
    %c0_4 = arith.constant 0 : index
    %c0_5 = arith.constant 0 : index
    %10 = vector.load %arg5[%c0_4, %c0_5] : memref<4x32xf32, #tpu.memory_space<vmem>>, vector<4x32xf32>
    %cst = arith.constant dense<0.000000e+00> : vector<4x32xf32>
    %11 = tpu.matmul %9, %3, %cst {dimension_numbers = #tpu.dot_dimension_numbers<[1], [0], [0], [1], [0, 0, 1, 1], [], []>} : vector<4x512xf32>, vector<512x32xf32>, vector<4x32xf32> -> vector<4x32xf32>
    %12 = arith.addf %10, %11 : vector<4x32xf32>
    %c0_6 = arith.constant 0 : index
    %c0_7 = arith.constant 0 : index
    %13 = vector.load %arg5[%c0_6, %c0_7] : memref<4x32xf32, #tpu.memory_space<vmem>>, vector<4x32xf32>
    tpu.vector_store %arg5[%c0_6, %c0_7], %12 {strides = array<i32>} : memref<4x32xf32, #tpu.memory_space<vmem>>, vector<4x32xf32>,
    %c0_8 = arith.constant 0 : index
    %c0_9 = arith.constant 0 : index
    %14 = vector.load %arg6[%c0_8, %c0_9] : memref<4x1xf32, #tpu.memory_space<vmem>>, vector<4x1xf32>
    %15 = arith.extui %7 : vector<4x512xi1> to vector<4x512xi32>
    %16 = arith.sitofp %15 : vector<4x512xi32> to vector<4x512xf32>
    %cst_10 = arith.constant dense<0.000000e+00> : vector<4xf32>
    %17 = vector.multi_reduction <add>, %16, %cst_10 [1] : vector<4x512xf32> to vector<4xf32>
    %18 = vector.shape_cast %17 : vector<4xf32> to vector<4x1xf32>
    %19 = arith.addf %14, %18 : vector<4x1xf32>
    %c0_11 = arith.constant 0 : index
    %c0_12 = arith.constant 0 : index
    %20 = vector.load %arg6[%c0_11, %c0_12] : memref<4x1xf32, #tpu.memory_space<vmem>>, vector<4x1xf32>
    tpu.vector_store %arg6[%c0_11, %c0_12], %19 {strides = array<i32>} : memref<4x1xf32, #tpu.memory_space<vmem>>, vector<4x1xf32>,
    %c0_i32_13 = arith.constant 0 : i32
    %21 = arith.cmpi eq, %arg1, %c0_i32_13 : i32
    %22 = arith.extui %21 : i1 to i32
    %c0_i32_14 = arith.constant 0 : i32
    %23 = arith.cmpi ne, %22, %c0_i32_14 : i32
    scf.if %23 {
      %c0_15 = arith.constant 0 : index
      %c0_16 = arith.constant 0 : index
      %24 = vector.load %arg6[%c0_15, %c0_16] : memref<4x1xf32, #tpu.memory_space<vmem>>, vector<4x1xf32>
      %cst_17 = arith.constant 0.000000e+00 : f32
      %25 = vector.broadcast %cst_17 : f32 to vector<4x1xf32>
      %26 = arith.cmpf ogt, %24, %25 : vector<4x1xf32>
      %cst_18 = arith.constant 1.000000e+00 : f32
      %27 = vector.broadcast %cst_18 : f32 to vector<4x1xf32>
      %28 = arith.maximumf %24, %27 : vector<4x1xf32>
      %cst_19 = arith.constant 1.000000e+00 : f32
      %29 = vector.broadcast %cst_19 : f32 to vector<4x1xf32>
      %30 = arith.divf %29, %28 : vector<4x1xf32>
      %cst_20 = arith.constant 0.000000e+00 : f32
      %31 = vector.broadcast %cst_20 : f32 to vector<4x1xf32>
      %32 = arith.select %26, %30, %31 : vector<4x1xi1>, vector<4x1xf32>
      %c0_21 = arith.constant 0 : index
      %c0_22 = arith.constant 0 : index
      %33 = vector.load %arg5[%c0_21, %c0_22] : memref<4x32xf32, #tpu.memory_space<vmem>>, vector<4x32xf32>
      %34 = vector.broadcast %32 : vector<4x1xf32> to vector<4x32xf32>
      %35 = arith.mulf %33, %34 : vector<4x32xf32>
      %c0_23 = arith.constant 0 : index
      %c0_24 = arith.constant 0 : index
      %36 = vector.load %arg4[%c0_23, %c0_24] : memref<4x32xf32, #tpu.memory_space<vmem>>, vector<4x32xf32>
      tpu.vector_store %arg4[%c0_23, %c0_24], %35 {strides = array<i32>} : memref<4x32xf32, #tpu.memory_space<vmem>>, vector<4x32xf32>,
    } else {
    }
    return
  }
  func.func @transform_0(%arg0: i32, %arg1: i32) -> (i32, i32) {
    %c0_i32 = arith.constant 0 : i32
    %c0_i32_0 = arith.constant 0 : i32
    return %c0_i32, %arg1 : i32, i32
  }
  func.func @transform_1(%arg0: i32, %arg1: i32) -> (i32, i32) {
    %c0_i32 = arith.constant 0 : i32
    return %arg1, %arg0 : i32, i32
  }
  func.func @transform_2(%arg0: i32, %arg1: i32) -> (i32, i32) {
    %c0_i32 = arith.constant 0 : i32
    %c0_i32_0 = arith.constant 0 : i32
    return %c0_i32, %arg0 : i32, i32
  }
}

</mosaic_0001>

<bundles_post_ra>
// kernel: tpu_custom_call.1
= control target key start
LH: loop header
LB: loop body
LE: loop exit
PB: predicated region body
PF: predicated region fallthrough
CT: control target
= control target key end

     0   :  { %v85_v0 = vlaneseq  ;;  %vm18_vm0 = vcmask 3072   ;;  %v411_v11 = vmov 0.0   ;;  %vm260_vm1 = vcmask 1043456   ;;  %s689_s0 = inlined_call_operand.vmem [shape: s32[1,512], index: 0, kind: input, shape index: {}]   ;;  %s690_s1 = inlined_call_operand.vmem [shape: f32[512,32], index: 1, kind: input, shape index: {}]   ;;  %s691_s2 = inlined_call_operand.hbm [shape: f32[4,32], index: 2, kind: output, shape index: {}]  }
   0x1   :  { %v51_v1 = vld [vmem:[%s690_s1 + $0xf8] sm:$0xff]  ;;  %v84_v3 = vld [vmem:[%s689_s0] sm:$0xf]  ;;  %v50_v6 = vld [vmem:[%s690_s1 + $0xf0] sm:$0xff]  ;;  %19 = vst.msk [vmem:[#allocation3] sm:$0xf] %vm18_vm0, %v411_v11 }
   0x2   :  { %v83_v2 = vld [vmem:[%s690_s1 + $0x1f8] sm:$0xff]  ;;  %312 = vmatprep.subr.mxu0 %v51_v1  ;;  %v448_v7 = vshrl.u32 %v85_v0, 7  ;;  %v82_v8 = vld [vmem:[%s690_s1 + $0x1f0] sm:$0xff]  ;;  %v49_v12 = vld [vmem:[%s690_s1 + $0xe8] sm:$0xff] }
   0x3   :  { %347 = vmatprep.subr.mxu1 %v83_v2  ;;  %v35_v4 = vld [vmem:[%s690_s1 + $0x78] sm:$0xff]  ;;  %v34_v9 = vld [vmem:[%s690_s1 + $0x70] sm:$0xff]  ;;  %v81_v13 = vld [vmem:[%s690_s1 + $0x1e8] sm:$0xff] }
   0x4   :  { %v67_v5 = vld [vmem:[%s690_s1 + $0x178] sm:$0xff]  ;;  %313 = vmatpush3.msra.mxu0 %v35_v4  ;;  %v66_v10 = vld [vmem:[%s690_s1 + $0x170] sm:$0xff]  ;;  %v33_v14 = vld [vmem:[%s690_s1 + $0x68] sm:$0xff]  ;;  %v89_v15 = vsub.s32 0, %v448_v7  ;;  %v93_v16 = vsub.s32 1, %v448_v7  ;;  %v97_v17 = vsub.s32 2, %v448_v7 }
   0x5   :  { %348 = vmatpush3.msra.mxu1 %v67_v5  ;;  %314 = vmatprep.subr.mxu0 %v50_v6  ;;  %v101_v18 = vsub.s32 3, %v448_v7  ;;  %v65_v19 = vld [vmem:[%s690_s1 + $0x168] sm:$0xff]  ;;  %v48_v20 = vld [vmem:[%s690_s1 + $0xe0] sm:$0xff]  ;;  %v47_v28 = vld [vmem:[%s690_s1 + $0xd8] sm:$0xff] }
   0x6   :  { %349 = vmatprep.subr.mxu1 %v82_v8  ;;  %315 = vmatpush3.msra.mxu0 %v34_v9  ;;  %v80_v21 = vld [vmem:[%s690_s1 + $0x1e0] sm:$0xff]  ;;  %v483_v22 = vrot.slane %v84_v3, %v89_v15  ;;  %v485_v23 = vrot.slane %v84_v3, %v93_v16  ;;  %v487_v24 = vrot.slane %v84_v3, %v97_v17  ;;  %v79_v29 = vld [vmem:[%s690_s1 + $0x1d8] sm:$0xff]  ;;  %v46_v36 = vld [vmem:[%s690_s1 + $0xd0] sm:$0xff] }
   0x7   :  { %350 = vmatpush3.msra.mxu1 %v66_v10  ;;  %316 = vmatprep.subr.mxu0 %v49_v12  ;;  %v489_v25 = vrot.slane %v84_v3, %v101_v18  ;;  %v32_v26 = vld [vmem:[%s690_s1 + $0x60] sm:$0xff]  ;;  %v31_v30 = vld [vmem:[%s690_s1 + $0x58] sm:$0xff]  ;;  %v78_v37 = vld [vmem:[%s690_s1 + $0x1d0] sm:$0xff] }
   0x8   :  { %351 = vmatprep.subr.mxu1 %v81_v13  ;;  %317 = vmatpush3.msra.mxu0 %v33_v14  ;;  %v64_v27 = vld [vmem:[%s690_s1 + $0x160] sm:$0xff]  ;;  %vm103_vm2 = vcmp.eq.s32.totalorder %v448_v7, %v483_v22  ;;  %vm104_vm3 = vcmp.eq.s32.totalorder %v448_v7, %v485_v23  ;;  %vm105_vm4 = vcmp.eq.s32.totalorder %v448_v7, %v487_v24  ;;  %v63_v31 = vld [vmem:[%s690_s1 + $0x158] sm:$0xff]  ;;  %v30_v41 = vld [vmem:[%s690_s1 + $0x50] sm:$0xff] }
   0x9   :  { %352 = vmatpush3.msra.mxu1 %v65_v19  ;;  %318 = vmatprep.subr.mxu0 %v48_v20  ;;  %vm106_vm5 = vcmp.eq.s32.totalorder %v448_v7, %v489_v25  ;;  %v304_v32 = vsel %vm103_vm2, 1.0, %v411_v11  ;;  %v305_v33 = vsel %vm104_vm3, 1.0, %v411_v11  ;;  %v306_v34 = vsel %vm105_vm4, 1.0, %v411_v11  ;;  %v62_v42 = vld [vmem:[%s690_s1 + $0x150] sm:$0xff]  ;;  %v45_v44 = vld [vmem:[%s690_s1 + $0xc8] sm:$0xff]  ;;  %v44_v50 = vld [vmem:[%s690_s1 + $0xc0] sm:$0xff] }
   0xa   :  { %353 = vmatprep.subr.mxu1 %v80_v21  ;;  %v307_v35 = vsel %vm106_vm5, 1.0, %v411_v11  ;;  %319 = vmatpush3.msra.mxu0 %v32_v26  ;;  %v261_v38 = vsel %vm260_vm1, %v304_v32, 0.0  ;;  %v262_v39 = vsel %vm260_vm1, %v305_v33, 0.0  ;;  %v264_v40 = vsel %vm260_vm1, %v306_v34, 0.0  ;;  %v77_v45 = vld [vmem:[%s690_s1 + $0x1c8] sm:$0xff]  ;;  %v76_v51 = vld [vmem:[%s690_s1 + $0x1c0] sm:$0xff] }
   0xb   :  { %354 = vmatpush3.msra.mxu1 %v64_v27  ;;  %320 = vmatprep.subr.mxu0 %v47_v28  ;;  %v263_v43 = vadd.f32 %v262_v39, %v261_v38  ;;  %v266_v46 = vsel %vm260_vm1, %v307_v35, 0.0  ;;  %v29_v47 = vld [vmem:[%s690_s1 + $0x48] sm:$0xff]  ;;  %v28_v52 = vld [vmem:[%s690_s1 + $0x40] sm:$0xff]  ;;  %v43_v55 = vld [vmem:[%s690_s1 + $0xb8] sm:$0xff] }
   0xc   :  { %355 = vmatprep.subr.mxu1 %v79_v29  ;;  %321 = vmatpush3.msra.mxu0 %v31_v30  ;;  %v61_v48 = vld [vmem:[%s690_s1 + $0x148] sm:$0xff]  ;;  %v60_v54 = vld [vmem:[%s690_s1 + $0x140] sm:$0xff]  ;;  %v75_v56 = vld [vmem:[%s690_s1 + $0x1b8] sm:$0xff] }
   0xd   :  { %356 = vmatpush3.msra.mxu1 %v63_v31  ;;  %322 = vmatprep.subr.mxu0 %v46_v36  ;;  %v265_v49 = vadd.f32 %v264_v40, %v263_v43  ;;  %v27_v57 = vld [vmem:[%s690_s1 + $0x38] sm:$0xff]  ;;  %v42_v59 = vld [vmem:[%s690_s1 + $0xb0] sm:$0xff]  ;;  %v41_v63 = vld [vmem:[%s690_s1 + $0xa8] sm:$0xff] }
   0xe   :  { %357 = vmatprep.subr.mxu1 %v78_v37  ;;  %323 = vmatpush3.msra.mxu0 %v30_v41  ;;  %v59_v58 = vld [vmem:[%s690_s1 + $0x138] sm:$0xff]  ;;  %v74_v60 = vld [vmem:[%s690_s1 + $0x1b0] sm:$0xff]  ;;  %v73_v0 = vld [vmem:[%s690_s1 + $0x1a8] sm:$0xff] }
   0xf   :  { %358 = vmatpush3.msra.mxu1 %v62_v42  ;;  %324 = vmatprep.subr.mxu0 %v45_v44  ;;  %v267_v53 = vadd.f32 %v266_v46, %v265_v49  ;;  %v26_v61 = vld [vmem:[%s690_s1 + $0x30] sm:$0xff]  ;;  %v25_v1 = vld [vmem:[%s690_s1 + $0x28] sm:$0xff]  ;;  %v40_v3 = vld [vmem:[%s690_s1 + $0xa0] sm:$0xff] }
  0x10   :  { %359 = vmatprep.subr.mxu1 %v77_v45  ;;  %325 = vmatpush3.msra.mxu0 %v29_v47  ;;  %v58_v62 = vld [vmem:[%s690_s1 + $0x130] sm:$0xff]  ;;  %v57_v2 = vld [vmem:[%s690_s1 + $0x128] sm:$0xff]  ;;  %v72_v4 = vld [vmem:[%s690_s1 + $0x1a0] sm:$0xff] }
  0x11   :  { %360 = vmatpush3.msra.mxu1 %v61_v48  ;;  %326 = vmatprep.subr.mxu0 %v44_v50  ;;  %v24_v5 = vld [vmem:[%s690_s1 + $0x20] sm:$0xff] }
  0x12   :  { %361 = vmatprep.subr.mxu1 %v76_v51  ;;  %268 = vadd.xlane.f32.xlu0 %v267_v53 }
  0x13   :  { %327 = vmatpush3.msra.mxu0 %v28_v52  ;;  %362 = vmatpush3.msra.mxu1 %v60_v54 }
  0x14   :  { %328 = vmatprep.subr.mxu0 %v43_v55  ;;  %363 = vmatprep.subr.mxu1 %v75_v56 }
  0x15   :  { %329 = vmatpush3.msra.mxu0 %v27_v57  ;;  %364 = vmatpush3.msra.mxu1 %v59_v58 }
  0x16   :  { %330 = vmatprep.subr.mxu0 %v42_v59  ;;  %365 = vmatprep.subr.mxu1 %v74_v60 }
  0x17   :  { %331 = vmatpush3.msra.mxu0 %v26_v61  ;;  %366 = vmatpush3.msra.mxu1 %v58_v62 }
  0x18   :  { %332 = vmatprep.subr.mxu0 %v41_v63 }
  0x19   :  { %7 = vsyncpa [#allocation5], 0  ;;  %367 = vmatprep.subr.mxu1 %v73_v0  ;;  %333 = vmatpush3.msra.mxu0 %v25_v1  ;;  %v56_v6 = vld [vmem:[%s690_s1 + $0x120] sm:$0xff]  ;;  %v39_v8 = vld [vmem:[%s690_s1 + $0x98] sm:$0xff]  ;;  %v412_v29 = vmov 1.0   ;;  %v413_v30 = vmov 0  }
  0x1a   :  { %368 = vmatpush3.msra.mxu1 %v57_v2  ;;  %334 = vmatprep.subr.mxu0 %v40_v3  ;;  %v71_v9 = vld [vmem:[%s690_s1 + $0x198] sm:$0xff]  ;;  %v38_v13 = vld [vmem:[%s690_s1 + $0x90] sm:$0xff]  ;;  %v37_v17 = vld [vmem:[%s690_s1 + $0x88] sm:$0xff]  ;;  %vm16_vm6 = vcmask 257024  }
  0x1b   :  { %v23_v10 = vld [vmem:[%s690_s1 + $0x18] sm:$0xff]  ;;  %369 = vmatprep.subr.mxu1 %v72_v4  ;;  %335 = vmatpush3.msra.mxu0 %v24_v5  ;;  %v70_v14 = vld [vmem:[%s690_s1 + $0x190] sm:$0xff]  ;;  %v69_v18 = vld [vmem:[%s690_s1 + $0x188] sm:$0xff]  ;;  %17 = vst.msk [vmem:[#allocation2] sm:$0xf] %vm16_vm6, %v411_v11 }
  0x1c   :  { %v55_v12 = vld [vmem:[%s690_s1 + $0x118] sm:$0xff]  ;;  %370 = vmatpush3.msra.mxu1 %v56_v6  ;;  %336 = vmatprep.subr.mxu0 %v39_v8  ;;  %v22_v15 = vld [vmem:[%s690_s1 + $0x10] sm:$0xff]  ;;  %v21_v19 = vld [vmem:[%s690_s1 + $0x8] sm:$0xff] }
  0x1d   :  { %371 = vmatprep.subr.mxu1 %v71_v9  ;;  %337 = vmatpush3.msra.mxu0 %v23_v10  ;;  %v54_v16 = vld [vmem:[%s690_s1 + $0x110] sm:$0xff]  ;;  %v53_v20 = vld [vmem:[%s690_s1 + $0x108] sm:$0xff]  ;;  %v36_v21 = vld [vmem:[%s690_s1 + $0x80] sm:$0xff] }
  0x1e   :  { %372 = vmatpush3.msra.mxu1 %v55_v12  ;;  %338 = vmatprep.subr.mxu0 %v38_v13  ;;  %v68_v26 = vld [vmem:[%s690_s1 + $0x180] sm:$0xff] }
  0x1f   :  { %373 = vmatprep.subr.mxu1 %v70_v14  ;;  %339 = vmatpush3.msra.mxu0 %v22_v15  ;;  %v20_v27 = vld [vmem:[%s690_s1] sm:$0xff] }
  0x20   :  { %374 = vmatpush3.msra.mxu1 %v54_v16  ;;  %340 = vmatprep.subr.mxu0 %v37_v17  ;;  %v52_v28 = vld [vmem:[%s690_s1 + $0x100] sm:$0xff]  ;;  %s414_s1 = smov [#allocation4]  }
  0x21   :  { %375 = vmatprep.subr.mxu1 %v69_v18  ;;  %341 = vmatpush3.msra.mxu0 %v21_v19  ;;  %v259_v31 = vld [vmem:[#allocation3] sm:$0xf]  ;;  %s296_s22 = sshll.u32 %s414_s1, 4  ;;  %s297_s22 = int_to_ptr.vmem [resolvable:$true] %s296_s22 }
  0x22   :  { %376 = vmatpush3.msra.mxu1 %v53_v20  ;;  %342 = vmatprep.subr.mxu0 %v36_v21  ;;  %v115_v39 = vld [vmem:[#allocation2] sm:$0xf]  ;;  %s389_s23 = scalar_lea.vmem %s297_s22, 64  ;;  %p394_p1 = scmp.lt.s32.totalorder %s297_s22, %s297_s22 }
  0x23   :  { %377 = vmatprep.subr.mxu1 %v68_v26  ;;  %343 = vmatpush3.msra.mxu0 %v20_v27  ;;  %p390_p0 = scmp.ne.s32.totalorder %s297_s22, %s389_s23  ;;  %p395_p2 = scmp.lt.s32.totalorder %s389_s23, %s389_s23 }
  0x24   :  { %308 = vmatprep.mubr.msk.f32.mxu0 %vm104_vm3, %v412_v29  ;;  %378 = vmatpush3.msra.mxu1 %v52_v28 }
  0x25   :  { %310 = vmatprep.mubr.msk.f32.mxu1 %vm106_vm5, %v412_v29  ;;  %309 = vmatmul.mubr.msk.f32.vlgmr.msra.gmra.mxu0 %vm103_vm2, %v412_v29  ;;  %p396_p3 = por %p395_p2, %p394_p1 }
  0x26   :  { %311 = vmatmul.mubr.msk.f32.vlgmr.msra.gmra.mxu1 %vm105_vm4, %v412_v29  ;;  %386 = vset.pattern.permute.xlu0 %v413_v30 }
  0x27   :  { %p397_p4 = pnand %p396_p3, %p390_p0 }
  0x9b   :  { %v269_v32 = vpop.xlane.xlu0 %268 }
  0x9c   :  { %v270_v33 = vadd.f32 %v269_v32, %v259_v31 }
  0x9e   :  { %272 = vst.msk [vmem:[#allocation3] sm:$0xf] %vm18_vm0, %v270_v33 }
  0xa5   :  { %v276_v23 = vld [vmem:[#allocation3] sm:$0xf] }
  0xa6   :  { %v278_v25 = vmax.f32 %v276_v23, 1.0  ;;  %vm277_vm7 = vcmp.gt.f32.partialorder %v276_v23, 0.0 }
  0xa8   :  { %387 = vrcp.f32 %v278_v25 }
  0xb5   :  { %v388_v22 = vpop.eup %387 }
  0xb6   :  { %v281_v34 = vsel %vm277_vm7, %v388_v22, 0.0 }
  0xb7   :  { %285 = vperm.xlu0 %386, %v281_v34  }
  0xe5   :  { %v344_v7 = vpop.f32.mrf.mxu0 }
  0xe6   :  { %v379_v24 = vpop.f32.mrf.mxu1 }
  0xe7   :  { %v345_v35 = vpop.f32.mrf.mxu0 }
  0xe8   :  { %v346_v36 = vadd.f32 %v345_v35, %v344_v7  ;;  %v380_v37 = vpop.f32.mrf.mxu1 }
  0xe9   :  { %v381_v38 = vadd.f32 %v380_v37, %v379_v24 }
  0xeb   :  { %v253_v40 = vadd.f32 %v381_v38, %v346_v36 }
  0xed   :  { %v256_v41 = vadd.f32 %v253_v40, %v115_v39 }
  0xef   :  { %258 = vst.msk [vmem:[#allocation2] sm:$0xf] %vm16_vm6, %v256_v41 }
  0xf6   :  { %v282_v42 = vld [vmem:[#allocation2] sm:$0xf] }
 0x132   :  { %v286_v11 = vpop.permute.xlu0 %285 }
 0x133   :  { %v288_v43 = vmul.f32 %v286_v11, %v282_v42 }
 0x135   :  { %289 = vst.msk [vmem:[#allocation4] sm:$0xf] %vm16_vm6, %v288_v43 }
 0x136   :  { %400 = shalt.err (!%p397_p4)
}
 0x137   :  { %299 = dma.vmem_to_hbm [thread:$0]  %s297_s22, 64, %s691_s2, [#allocation5]  }
 0x138   :  { %409 = dma.done.wait [#allocation5], 64  }
 0x139   :  { %410 = vsyncadd [#allocation5], 4294967232 }
 0x13a   :  { %303 = vsyncpa [#allocation5], 1 }

</bundles_post_ra>
